<compile_context>
chip_gen: v7x
topology: tpu7x:2x2x1
jax: 0.10.0
libtpu: 0.0.40
codegen_flags: <defaults>
</compile_context>

<pallas_src>
import functools
import math

import numpy as np

import jax
import jax.numpy as jnp
from jax.experimental import pallas as pl
from jax.experimental.pallas import tpu as pltpu


XYZ_INDEX = dict(x=0, y=1, z=2)

_LANES = 128     # TPU vreg lane width
_TRIPLET = 3     # xyz


def _normalize_index(index):
    """Replicates SelectXYZ.__init__ index normalization."""
    def to_positive(v):
        while v < 0:
            v += 3
        assert 0 <= v <= 2
        return v

    if isinstance(index, int):
        index = [index]
    elif isinstance(index, str):
        index = [XYZ_INDEX[c] for c in index]
    return tuple(to_positive(v) for v in index)


def _round_up(v, mult):
    return ((v + mult - 1) // mult) * mult


# ---------------------------------------------------------------------------
# Path 1: lane-dense kernel — input viewed as (M//128, 384).
# ---------------------------------------------------------------------------

def _select_dense_kernel(x_ref, s_ref, o_ref):
    """x_ref: (TB, 384); s_ref: (384, 128*K) 0/1 bf16; o_ref: (TB, 128*K)."""
    x = x_ref[...]
    s = s_ref[...]
    if x.dtype == jnp.float32:
        # Exact 3-way bf16 decomposition of f32 (hi + mid + lo == x bit-exact
        # for normal floats): three single-pass bf16 matmuls against the 0/1
        # permutation matrix reproduce the selected f32 values exactly while
        # using half the MXU passes of a precision=HIGHEST f32 matmul.
        hi = x.astype(jnp.bfloat16)
        r1 = x - hi.astype(jnp.float32)
        mid = r1.astype(jnp.bfloat16)
        lo = (r1 - mid.astype(jnp.float32)).astype(jnp.bfloat16)
        acc = (jnp.dot(hi, s, preferred_element_type=jnp.float32)
               + jnp.dot(mid, s, preferred_element_type=jnp.float32)
               + jnp.dot(lo, s, preferred_element_type=jnp.float32))
    else:
        # bf16 inputs: a single bf16 x bf16 -> f32 pass is exact.
        acc = jnp.dot(x, s, preferred_element_type=jnp.float32)
    o_ref[...] = acc.astype(o_ref.dtype)


def _selection_matrix(index, dtype=jnp.bfloat16):
    """0/1 matrix S with S[3*j + index[ki], k*j + ki] = 1 (one nonzero/col)."""
    k = len(index)
    s = np.zeros((_TRIPLET * _LANES, _LANES * k), dtype=np.float32)
    for j in range(_LANES):
        for ki, c in enumerate(index):
            # Output columns interleaved per triplet (l = k*j + ki) so the
            # kernel output reshapes row-major straight back to (..., K).
            s[_TRIPLET * j + c, k * j + ki] = 1.0
    return jnp.asarray(s, dtype=dtype)


def _select_xyz_dense(x, index, block_rows):
    lead_shape = x.shape[:-1]
    k = len(index)
    m = math.prod(lead_shape)
    mb = m // _LANES                              # rows of the (mb, 384) view
    x2 = x.reshape(mb, _TRIPLET * _LANES)

    # Large tiles amortize per-step overhead; clamp keeps >= 2 grid steps when
    # possible so both v7x TensorCores get a share of the M axis.
    tb = min(block_rows, max(16, _round_up(pl.cdiv(mb, 2), 16)))
    grid = (pl.cdiv(mb, tb),)

    s = _selection_matrix(index)

    out2 = pl.pallas_call(
        _select_dense_kernel,
        out_shape=jax.ShapeDtypeStruct((mb, _LANES * k), x.dtype),
        grid_spec=pltpu.PrefetchScalarGridSpec(
            num_scalar_prefetch=0,
            grid=grid,
            in_specs=[
                pl.BlockSpec((tb, _TRIPLET * _LANES), lambda i: (i, 0)),
                pl.BlockSpec((_TRIPLET * _LANES, _LANES * k), lambda i: (0, 0)),
            ],
            out_specs=pl.BlockSpec((tb, _LANES * k), lambda i: (i, 0)),
        ),
        compiler_params=pltpu.CompilerParams(
            dimension_semantics=("parallel",)),
    )(x2, s)

    return out2.reshape(*lead_shape, k)


# ---------------------------------------------------------------------------
# Path 2: row-tile fallback — (TM, 3) -> (TM, K), any M / dtype.
# ---------------------------------------------------------------------------

def _select_rows_kernel(x_ref, o_ref, *, index, contiguous):
    """x_ref: (TM, 3); o_ref: (TM, K)."""
    x = x_ref[...]
    if contiguous:
        a = index[0]
        o_ref[...] = x[:, a:a + len(index)]          # single static slice
    else:
        cols = [x[:, c:c + 1] for c in index]
        o_ref[...] = cols[0] if len(cols) == 1 else jnp.concatenate(cols, axis=-1)


def _select_xyz_rows(x, index, block_rows):
    lead_shape = x.shape[:-1]
    k = len(index)
    m = math.prod(lead_shape)
    x2 = x.reshape(m, _TRIPLET)

    # Multiple of 32 rows (covers f32/bf16/int8 sublane packing); no padding —
    # the ragged final block is masked by Pallas.
    tm = min(block_rows, max(32, _round_up(pl.cdiv(m, 2), 32)))
    grid = (pl.cdiv(m, tm),)
    contiguous = all(index[i + 1] == index[i] + 1 for i in range(k - 1))

    kernel = functools.partial(_select_rows_kernel, index=index,
                               contiguous=contiguous)
    out2 = pl.pallas_call(
        kernel,
        out_shape=jax.ShapeDtypeStruct((m, k), x.dtype),
        grid_spec=pltpu.PrefetchScalarGridSpec(
            num_scalar_prefetch=0,
            grid=grid,
            in_specs=[pl.BlockSpec((tm, _TRIPLET), lambda i: (i, 0))],
            out_specs=pl.BlockSpec((tm, k), lambda i: (i, 0)),
        ),
        compiler_params=pltpu.CompilerParams(
            dimension_semantics=("parallel",)),
    )(x2)
    return out2.reshape(*lead_shape, k)


# ---------------------------------------------------------------------------
# Public wrapper (SelectXYZ.forward equivalent).
# ---------------------------------------------------------------------------

def select_xyz(x, index, *, dense_block_rows=2048, row_block_rows=4096):
    """Pallas equivalent of SelectXYZ(index).forward(x); x has shape (..., 3)."""
    index = _normalize_index(index)
    k = len(index)
    assert x.shape[-1] == _TRIPLET
    assert k >= 1, "empty index is not supported"

    lead_shape = x.shape[:-1]
    m = math.prod(lead_shape)
    if m == 0:
        return jnp.zeros((*lead_shape, k), dtype=x.dtype)
    if index == (0, 1, 2):
        return x  # identity selection

    dense_ok = (m % _LANES == 0) and (x.dtype in (jnp.float32, jnp.bfloat16))
    # TODO(synk): the matmul-based dense path assumes finite inputs (a 0*inf /
    # 0*nan in a non-selected component would poison the selected value); route
    # such inputs through the row path if that matters.
    if dense_ok:
        return _select_xyz_dense(x, index, dense_block_rows)
    return _select_xyz_rows(x, index, row_block_rows)


if __name__ == "__main__":
    key = jax.random.PRNGKey(0)
    k1, k2 = jax.random.split(key)

    # Lane-dense path: M = 2 * 16 * 128 = 4096 triplets (multiple of 128).
    x_big = jax.random.normal(k1, (2, 16, 128, 3), dtype=jnp.float32)
    x_bf16 = x_big.astype(jnp.bfloat16)
    # Row-tile fallback path: ragged M = 3 * 50 = 150 triplets.
    x_small = jax.random.normal(k2, (3, 50, 3), dtype=jnp.float32)

    def check(x, index, rtol, atol):
        out = select_xyz(x, index)
        jax.block_until_ready(out)
        idx = list(_normalize_index(index))
        ref = x[..., idx]
        assert out.shape == ref.shape, (index, out.shape, ref.shape)
        assert out.dtype == ref.dtype, (index, out.dtype, ref.dtype)
        ok = jnp.allclose(out.astype(jnp.float32), ref.astype(jnp.float32),
                          rtol=rtol, atol=atol)
        assert bool(ok), f"value mismatch for index={index!r}"

    # Dense (lane-packed) path, float32.
    for index in ["xy", "z", [0, -1], "zyx", 1, "xyz"]:
        check(x_big, index, rtol=1e-5, atol=1e-6)
    # Dense path, bfloat16 (single-pass matmul branch).
    for index in ["xz", "y"]:
        check(x_bf16, index, rtol=1e-2, atol=1e-2)
    # Row-tile fallback path (ragged M; exact slicing / concat).
    for index in ["yz", [2, 0], 0]:
        check(x_small, index, rtol=0.0, atol=0.0)

    print("KERNEL_OK")
</pallas_src>

<mosaic_0001>
module attributes {stable_mosaic.version = 11 : i64} {
  func.func @_select_dense_kernel(%arg0: i32, %arg1: memref<16x384xf32, #tpu.memory_space<vmem>>, %arg2: memref<384x256xbf16, #tpu.memory_space<vmem>>, %arg3: memref<16x256xf32, #tpu.memory_space<vmem>>) attributes {dimension_semantics = [#tpu.dimension_semantics<parallel>], iteration_bounds = array<i64: 2>, scalar_prefetch = 0 : i64, scratch_operands = 0 : i64, tpu.core_type = #tpu.core_type<tc>, window_params = [{transform_indices = @transform_0, window_bounds = array<i64: 16, 384>}, {pipeline_mode = #tpu.pipeline_mode<synchronous>, transform_indices = @transform_1, window_bounds = array<i64: 384, 256>}, {transform_indices = @transform_2, window_bounds = array<i64: 16, 256>}]} {
    %c0 = arith.constant 0 : index
    %c0_0 = arith.constant 0 : index
    %0 = vector.load %arg1[%c0, %c0_0] : memref<16x384xf32, #tpu.memory_space<vmem>>, vector<16x384xf32>
    %c0_1 = arith.constant 0 : index
    %c0_2 = arith.constant 0 : index
    %1 = vector.load %arg2[%c0_1, %c0_2] : memref<384x256xbf16, #tpu.memory_space<vmem>>, vector<384x256xbf16>
    %2 = arith.truncf %0 : vector<16x384xf32> to vector<16x384xbf16>
    %3 = arith.extf %2 : vector<16x384xbf16> to vector<16x384xf32>
    %4 = arith.subf %0, %3 : vector<16x384xf32>
    %5 = arith.truncf %4 : vector<16x384xf32> to vector<16x384xbf16>
    %6 = arith.extf %5 : vector<16x384xbf16> to vector<16x384xf32>
    %7 = arith.subf %4, %6 : vector<16x384xf32>
    %8 = arith.truncf %7 : vector<16x384xf32> to vector<16x384xbf16>
    %cst = arith.constant dense<0.000000e+00> : vector<16x256xf32>
    %9 = tpu.matmul %2, %1, %cst {dimension_numbers = #tpu.dot_dimension_numbers<[1], [0], [0], [1], [0, 0, 1, 1], [], []>} : vector<16x384xbf16>, vector<384x256xbf16>, vector<16x256xf32> -> vector<16x256xf32>
    %cst_3 = arith.constant dense<0.000000e+00> : vector<16x256xf32>
    %10 = tpu.matmul %5, %1, %cst_3 {dimension_numbers = #tpu.dot_dimension_numbers<[1], [0], [0], [1], [0, 0, 1, 1], [], []>} : vector<16x384xbf16>, vector<384x256xbf16>, vector<16x256xf32> -> vector<16x256xf32>
    %11 = arith.addf %9, %10 : vector<16x256xf32>
    %cst_4 = arith.constant dense<0.000000e+00> : vector<16x256xf32>
    %12 = tpu.matmul %8, %1, %cst_4 {dimension_numbers = #tpu.dot_dimension_numbers<[1], [0], [0], [1], [0, 0, 1, 1], [], []>} : vector<16x384xbf16>, vector<384x256xbf16>, vector<16x256xf32> -> vector<16x256xf32>
    %13 = arith.addf %11, %12 : vector<16x256xf32>
    %c0_5 = arith.constant 0 : index
    %c0_6 = arith.constant 0 : index
    %14 = vector.load %arg3[%c0_5, %c0_6] : memref<16x256xf32, #tpu.memory_space<vmem>>, vector<16x256xf32>
    tpu.vector_store %arg3[%c0_5, %c0_6], %13 {strides = array<i32>} : memref<16x256xf32, #tpu.memory_space<vmem>>, vector<16x256xf32>,
    return
  }
  func.func @transform_0(%arg0: i32) -> (i32, i32) {
    %c0_i32 = arith.constant 0 : i32
    %c0_i32_0 = arith.constant 0 : i32
    return %arg0, %c0_i32 : i32, i32
  }
  func.func @transform_1(%arg0: i32) -> (i32, i32) {
    %c0_i32 = arith.constant 0 : i32
    %c0_i32_0 = arith.constant 0 : i32
    %c0_i32_1 = arith.constant 0 : i32
    return %c0_i32, %c0_i32_0 : i32, i32
  }
  func.func @transform_2(%arg0: i32) -> (i32, i32) {
    %c0_i32 = arith.constant 0 : i32
    %c0_i32_0 = arith.constant 0 : i32
    return %arg0, %c0_i32 : i32, i32
  }
}

</mosaic_0001>

<bundles_post_ra>
// kernel: tpu_custom_call.1
= control target key start
LH: loop header
LB: loop body
LE: loop exit
PB: predicated region body
PF: predicated region fallthrough
CT: control target
= control target key end

     0   :  { %7 = vsyncpa [#allocation3], 0  ;;  %s1742_s0 = inlined_call_operand.hbm [shape: f32[32,384], index: 0, kind: input, shape index: {}]   ;;  %s1743_s1 = inlined_call_operand.hbm [shape: bf16[384,256], index: 1, kind: input, shape index: {}]   ;;  %s1744_s2 = inlined_call_operand.hbm [shape: f32[32,256], index: 2, kind: output, shape index: {}]  }
   0x1   :  { %9 = vsyncpa [#allocation3 + $0x1], 0 }
   0x2   :  { %10 = vsyncpa [#allocation6], 0 }
   0x3   :  { %11 = vsyncpa [#allocation4], 0 }
   0x4   :  { %13 = vsyncpa [#allocation4 + $0x1], 0  ;;  %s1252_s9 = smov 0   ;;  %s1254_s10 = smov 0  }
   0x5   :  { %s1256_s11 = smov 0   ;;  %s1258_s12 = smov 0  }
   0x6 LB: > { %s1273_s13 = sadd.s32 4294967295, %s1225_s12   ;;  %s872_s14 = sadd.s32 4294967294, %s1225_s12   ;;  %s1225_s12 = sphi %s1258_s12, %s1776_s12   ;;  %s1221_s11 = sphi %s1256_s11, %s1775_s11   ;;  %s1217_s10 = sphi %s1254_s10, %s1774_s10   ;;  %s1213_s9 = sphi %s1252_s9, %s1773_s9  }
   0x7   : > { %p39_p0 = scmp.ne.s32.totalorder %s1217_s10, %s1213_s9  ;;  %p1745_p1 = scmp.eq.s32.totalorder %s1273_s13, 0 }
   0x8   : > { %p90_p3 = scmp.eq.s32.totalorder %s872_s14, 1  ;;  %p873_p5 = scmp.ge.s32.totalorder %s1225_s12, 1 }
   0x9   : > { %p1282_p4 = por %p1745_p1, %p39_p0  ;;  %p97_p7 = scmp.lt.s32.totalorder %s1225_s12, 3 }
   0xa   : > { %p1287_p6 = por %p90_p3, %p39_p0  ;;  %s1227_s18 = smov [#allocation5]  }
   0xb   : > { %s1752_s15 = scalar_select %p1282_p4, 1, 0 }
   0xc   : > { %s1753_s16 = scalar_select %p1287_p6, 1, 0 }
   0xd   : > { %p1292_p8 = pnand %p873_p5, %p97_p7  ;;  %s109_s19 = sshll.u32 %s1227_s18, 4  ;;  %s1296_s19 = int_to_ptr.vmem [resolvable:$true] %s109_s19 }
   0xe   : > { %s1308_s21 = sadd.s32 1, %s1225_s12   ;;  %s26_s22 = sadd.s32 1, %s1221_s11 }
   0xf   : > { %s1754_s17 = scalar_select %p1292_p8, 1, 0 }
  0x10   : > { %p969_p9 = pneg %p1292_p8  ;;  %s23_s23 = ssub.s32 %s1225_s12, %s1308_s21 }
  0x11   : > { %s1097_s26 = scalar_lea.hbm %s1743_s1, 6144 }
  0x12   : > { %p1303_p11 = pnand %p969_p9, %p1745_p1  ;;  %p1098_p12 = scmp.ne.s32.totalorder %s1743_s1, %s1097_s26 }
  0x13   : > { %p1104_p5 = scmp.lt.u32.totalorder %s1097_s26, %s1743_s1 }
  0x14   : > { %p1099_p13 = pneg %p1303_p11 }
  0x16   : > { %p1100_p0 = pnand %p1099_p13, %p1098_p12 }
  0x18   : > { %p1101_p3 = pneg %p1100_p0 }
  0x1a   : > { %p1106_p7 = pnand %p1104_p5, %p1101_p3 }
  0x1c   : > { %1109 = shalt.err (!%p1106_p7)
}
  0x1d   : > { %s1110_s3 = scalar_lea.vmem %s1296_s19, 6144  ;;  %p1118_p2 = scmp.lt.s32.totalorder %s1296_s19, %s1296_s19 }
  0x1e   : > { %p1111_p9 = scmp.ne.s32.totalorder %s1296_s19, %s1110_s3  ;;  %p1119_p6 = scmp.lt.s32.totalorder %s1110_s3, %s1110_s3 }
  0x20   : > { %p1113_p10 = pnand %p1111_p9, %p1099_p13  ;;  %p1120_p4 = por %p1119_p6, %p1118_p2 }
  0x22   : > { %p1114_p1 = pneg %p1113_p10 }
  0x24   : > { %p1121_p8 = pnand %p1120_p4, %p1114_p1 }
  0x26   : > { %1124 = shalt.err (!%p1121_p8)
}
  0x27   : > { %s1228_s4 = smov 128   ;;  %s1229_s5 = smov 8  }
  0x28   : > { %972 = dma.hbm_to_vmem [thread:$0]  (!%p1303_p11), %s1743_s1, 6144, %s1296_s19, [#allocation6], %s1228_s4, %s1228_s4, %s1229_s5  }
  0x29   : > { %p24_p2 = scmp.eq.s32.totalorder %s23_s23, 0  ;;  %p33_p1 = scmp.ne.s32.totalorder %s1221_s11, %s1217_s10 }
  0x2a   : > { %p34_p4 = scmp.eq.s32.totalorder %s1225_s12, 0  ;;  %p982_p6 = scmp.lt.s32.totalorder %s1225_s12, 2 }
  0x2b   : > { %s1339_s8 = scalar_select %p24_p2, %s1221_s11, %s26_s22  }
  0x2c   : > { %p35_p8 = por %p34_p4, %p33_p1  ;;  %p1756_p10 = scmp.eq.s32.totalorder %s1273_s13, 1 }
  0x2d   : > { %s123_s18 = sand.u32 1, %s1221_s11   ;;  %s959_s24 = smul.u32 768, %s1225_s12 }
  0x2e   : > { %p1343_p12 = por %p1756_p10, %p33_p1  ;;  %s958_s25 = smul.u32 48, %s123_s18 }
  0x2f   : > { %s1352_s27 = scalar_lea.hbm %s1742_s0, %s959_s24  ;;  %p1354_p11 = pnand %p982_p6, %p35_p8 }
  0x30   : > { %s127_s22 = scalar_lea.vmem [#allocation2], %s958_s25  ;;  %s1360_s28 = scalar_lea.sflag [#allocation3], %s123_s18 }
  0x31   : > { %s135_s23 = sshll.u32 %s127_s22, 4  ;;  %s1125_s29 = scalar_lea.hbm %s1352_s27, 768  ;;  %s1358_s23 = int_to_ptr.vmem [resolvable:$true] %s135_s23 }
  0x32   : > { %p1126_p13 = scmp.ne.s32.totalorder %s1352_s27, %s1125_s29  ;;  %p1127_p0 = pneg %p1354_p11 }
  0x33   : > { %s1130_s4 = scalar_lea.hbm %s1742_s0, 1536  ;;  %p1131_p7 = scmp.lt.u32.totalorder %s1352_s27, %s1742_s0 }
  0x34   : > { %p1128_p3 = pnand %p1127_p0, %p1126_p13  ;;  %p1132_p9 = scmp.lt.u32.totalorder %s1130_s4, %s1125_s29 }
  0x35   : > { %p1134_p1 = scmp.lt.u32.totalorder %s1125_s29, %s1352_s27 }
  0x36   : > { %p1129_p5 = pneg %p1128_p3  ;;  %p1133_p2 = por %p1132_p9, %p1131_p7 }
  0x38   : > { %p1135_p4 = por %p1134_p1, %p1133_p2 }
  0x3a   : > { %p1136_p6 = pnand %p1135_p4, %p1129_p5 }
  0x3c   : > { %1139 = shalt.err (!%p1136_p6)
}
  0x3d   : > { %s1140_s7 = scalar_lea.vmem %s1358_s23, 768  ;;  %s1230_s18 = smov [#allocation2]  }
  0x3e   : > { %p1141_p8 = scmp.ne.s32.totalorder %s1358_s23, %s1140_s7  ;;  %s1145_s24 = sshll.u32 %s1230_s18, 4  ;;  %s1146_s24 = int_to_ptr.vmem [resolvable:$false] %s1145_s24 }
  0x3f   : > { %s1147_s25 = scalar_lea.vmem %s1146_s24, 1536  ;;  %p1148_p3 = scmp.lt.s32.totalorder %s1358_s23, %s1146_s24 }
  0x40   : > { %p1143_p10 = pnand %p1141_p8, %p1127_p0  ;;  %p1149_p7 = scmp.lt.s32.totalorder %s1147_s25, %s1140_s7 }
  0x42   : > { %p1144_p13 = pneg %p1143_p10  ;;  %p1150_p9 = por %p1149_p7, %p1148_p3 }
  0x44   : > { %p1151_p2 = pnand %p1150_p9, %p1144_p13 }
  0x46   : > { %1154 = shalt.err (!%p1151_p2)
}
  0x47   : > { %s1231_s20 = smov 384   ;;  %s1232_s26 = smov 24  }
  0x48   : > { %976 = dma.hbm_to_vmem [thread:$0]  (!%p1354_p11), %s1352_s27, 768, %s1358_s23, %s1360_s28, %s1231_s20, %s1231_s20, %s1232_s26  }
  0x49   : > { %p1759_p0 = scmp.ne.s32.totalorder %s1754_s17, 0 }
  0x4b   : > { %147 = sbr.rel (%p1759_p0) target bundleno = 484 (0x1e4), region = 28 }
  0x52   : > { %s1391_s22 = sand.u32 1, %s1217_s10   ;;  %p1760_p5 = scmp.ne.s32.totalorder %s1752_s15, 0 }
  0x53   : > { %s960_s29 = smul.u32 48, %s1391_s22  ;;  %s150_s30 = scalar_lea.sflag [#allocation3], %s1391_s22 }
  0x55   : > { %s1395_s3 = scalar_lea.vmem [#allocation2], %s960_s29 }
  0x56   : > { %1200 = dma.done.wait (%p1760_p5), %s150_s30, 768  }
  0x57   : > { %1202 = vsyncadd (%p1760_p5), %s150_s30, 4294966528  ;;  %p1761_p11 = scmp.eq.s32.totalorder %s1273_s13, 0 }
  0x59   : > { %1204 = dma.done.wait (%p1761_p11), [#allocation6], 6144   ;;  %p1762_p1 = pmov %p1761_p11 }
  0x5a   : > { %v1748_v0 = vmov 0   ;;  %v1406_v1 = vld [vmem:[#allocation5 + $0x4] ss:$8 sps:$4 sm:$0xff]   ;;  %v1411_v3 = vld [vmem:[#allocation5] ss:$8 sps:$4 sm:$0xff]   ;;  %s881_s15 = sshll.u32 %s1391_s22, 5 }
  0x5b   : > { %1206 = vsyncadd (%p1762_p1), [#allocation6], 4294961152  ;;  %583 = vmatprep.mubr.bf16.mxu0 %v1748_v0  ;;  %v1408_v2 = vld [vmem:[#allocation5 + $0x104] ss:$8 sps:$4 sm:$0xff]   ;;  %508 = vmatprep.subr.bf16.mxu1 %v1406_v1  ;;  %v1413_v4 = vld [vmem:[#allocation5 + $0x100] ss:$8 sps:$4 sm:$0xff]  }
  0x5c   : > { %551 = vmatprep.subr.bf16.mxu0 %v1408_v2  ;;  %v1416_v5 = vld [vmem:[#allocation5 + $0x14] ss:$8 sps:$4 sm:$0xff]   ;;  %509 = vmatpush1.bf16.msra.mxu1 %v1411_v3  ;;  %v1422_v7 = vld [vmem:[#allocation5 + $0x10] ss:$8 sps:$4 sm:$0xff]   ;;  %v1428_v9 = vld [vmem:[#allocation5 + $0x24] ss:$8 sps:$4 sm:$0xff]  }
  0x5d   : > { %552 = vmatpush1.bf16.msra.mxu0 %v1413_v4  ;;  %v1420_v6 = vld [vmem:[#allocation5 + $0x114] ss:$8 sps:$4 sm:$0xff]   ;;  %510 = vmatprep.subr.bf16.mxu1 %v1416_v5  ;;  %v1425_v8 = vld [vmem:[#allocation5 + $0x110] ss:$8 sps:$4 sm:$0xff]   ;;  %v1430_v10 = vld [vmem:[#allocation5 + $0x124] ss:$8 sps:$4 sm:$0xff]  }
  0x5e   : > { %553 = vmatprep.subr.bf16.mxu0 %v1420_v6  ;;  %v1432_v11 = vld [vmem:[#allocation5 + $0x20] ss:$8 sps:$4 sm:$0xff]   ;;  %v1438_v13 = vld [vmem:[#allocation5 + $0x34] ss:$8 sps:$4 sm:$0xff]   ;;  %v1444_v15 = vld [vmem:[#allocation5 + $0x30] ss:$8 sps:$4 sm:$0xff]  }
  0x5f   : > { %v1434_v12 = vld [vmem:[#allocation5 + $0x120] ss:$8 sps:$4 sm:$0xff]   ;;  %v1442_v14 = vld [vmem:[#allocation5 + $0x134] ss:$8 sps:$4 sm:$0xff]   ;;  %v1448_v16 = vld [vmem:[#allocation5 + $0x130] ss:$8 sps:$4 sm:$0xff]  }
  0x60   : > { %511 = vmatpush1.bf16.msra.mxu1 %v1422_v7  ;;  %v1450_v17 = vld [vmem:[#allocation5 + $0x44] ss:$8 sps:$4 sm:$0xff]   ;;  %v1456_v19 = vld [vmem:[#allocation5 + $0x40] ss:$8 sps:$4 sm:$0xff]   ;;  %v1462_v21 = vld [vmem:[#allocation5 + $0x54] ss:$8 sps:$4 sm:$0xff]  }
  0x61   : > { %554 = vmatpush1.bf16.msra.mxu0 %v1425_v8  ;;  %512 = vmatprep.subr.bf16.mxu1 %v1428_v9  ;;  %v1454_v18 = vld [vmem:[#allocation5 + $0x144] ss:$8 sps:$4 sm:$0xff]   ;;  %v1458_v20 = vld [vmem:[#allocation5 + $0x140] ss:$8 sps:$4 sm:$0xff]   ;;  %v1466_v22 = vld [vmem:[#allocation5 + $0x154] ss:$8 sps:$4 sm:$0xff]  }
  0x62   : > { %555 = vmatprep.subr.bf16.mxu0 %v1430_v10  ;;  %v1468_v23 = vld [vmem:[#allocation5 + $0x50] ss:$8 sps:$4 sm:$0xff]   ;;  %v1474_v25 = vld [vmem:[#allocation5 + $0x64] ss:$8 sps:$4 sm:$0xff]   ;;  %v1486_v30 = vld [vmem:[#allocation5 + $0x60] ss:$8 sps:$4 sm:$0xff]  }
  0x63   : > { %v1472_v24 = vld [vmem:[#allocation5 + $0x150] ss:$8 sps:$4 sm:$0xff]   ;;  %v1478_v26 = vld [vmem:[#allocation5 + $0x164] ss:$8 sps:$4 sm:$0xff]   ;;  %v1488_v31 = vld [vmem:[#allocation5 + $0x160] ss:$8 sps:$4 sm:$0xff]  }
  0x64   : > { %513 = vmatpush1.bf16.msra.mxu1 %v1432_v11  ;;  %1763 = vst [vmem:[#allocation11_spill] sm:$0xff] %v1478_v26  ;;  %v183_v27 = vld [vmem:[%s1395_s3 + $0x10] sm:$0xff]  ;;  %v186_v28 = vld [vmem:[%s1395_s3 + $0x28] sm:$0xff]  ;;  %v185_v49 = vld [vmem:[%s1395_s3 + $0x20] sm:$0xff]  ;;  %s177_s17 = scalar_lea.vmem [#allocation7], %s881_s15  ;;  %s937_s19 = sshll.u32 %s1273_s13, 9 }
  0x65   : > { %556 = vmatpush1.bf16.msra.mxu0 %v1434_v12  ;;  %514 = vmatprep.subr.bf16.mxu1 %v1438_v13  ;;  %v1482_v29 = vpack.c.bf16 %v186_v28, %v183_v27  ;;  %v1492_v32 = vld [vmem:[#allocation5 + $0x74] ss:$8 sps:$4 sm:$0xff]   ;;  %v1500_v38 = vld [vmem:[#allocation5 + $0x70] ss:$8 sps:$4 sm:$0xff]   ;;  %v1506_v40 = vld [vmem:[#allocation5 + $0x84] ss:$8 sps:$4 sm:$0xff]   ;;  %s1698_s4 = scalar_lea.hbm %s1744_s2, %s937_s19 }
  0x66   : > { %557 = vmatprep.subr.bf16.mxu0 %v1442_v14  ;;  %v1494_v33 = vld [vmem:[#allocation5 + $0x174] ss:$8 sps:$4 sm:$0xff]   ;;  %v1502_v39 = vld [vmem:[#allocation5 + $0x170] ss:$8 sps:$4 sm:$0xff]   ;;  %v1510_v44 = vld [vmem:[#allocation5 + $0x80] ss:$8 sps:$4 sm:$0xff]  }
  0x67   : > { %v240_v34 = vunpack.c.l.bf16 %v1482_v29  ;;  %v243_v35 = vunpack.c.h.bf16 %v1482_v29  ;;  %v182_v45 = vld [vmem:[%s1395_s3 + $0x8] sm:$0xff]  ;;  %s789_s27 = sshll.u32 %s177_s17, 4  ;;  %s775_s13 = scalar_lea.sflag [#allocation4], %s1391_s22  ;;  %s1693_s27 = int_to_ptr.vmem [resolvable:$true] %s789_s27 }
  0x68   : > { %515 = vmatpush1.bf16.msra.mxu1 %v1444_v15  ;;  %v1519_v48 = vld [vmem:[#allocation5 + $0x94] ss:$8 sps:$4 sm:$0xff]   ;;  %v1522_v50 = vpack.c.bf16 %v185_v49, %v182_v45  ;;  %v1528_v52 = vld [vmem:[#allocation5 + $0x90] ss:$8 sps:$4 sm:$0xff]   ;;  %v1534_v55 = vld [vmem:[#allocation5 + $0xa4] ss:$8 sps:$4 sm:$0xff]  }
  0x69   : > { %558 = vmatpush1.bf16.msra.mxu0 %v1448_v16  ;;  %516 = vmatprep.subr.bf16.mxu1 %v1450_v17  ;;  %v246_v36 = vsub.f32 %v183_v27, %v240_v34  ;;  %v249_v37 = vsub.f32 %v186_v28, %v243_v35  ;;  %v1539_v58 = vld [vmem:[#allocation5 + $0xa0] ss:$8 sps:$4 sm:$0xff]   ;;  %v1543_v60 = vld [vmem:[#allocation5 + $0xb4] ss:$8 sps:$4 sm:$0xff]   ;;  %v1547_v61 = vld [vmem:[#allocation5 + $0xb0] ss:$8 sps:$4 sm:$0xff]  }
  0x6a   : > { %559 = vmatprep.subr.bf16.mxu0 %v1454_v18  ;;  %v239_v53 = vunpack.c.l.bf16 %v1522_v50  ;;  %v242_v54 = vunpack.c.h.bf16 %v1522_v50  ;;  %v1551_v62 = vld [vmem:[#allocation5 + $0xc4] ss:$8 sps:$4 sm:$0xff]   ;;  %v1555_v63 = vld [vmem:[#allocation5 + $0xc0] ss:$8 sps:$4 sm:$0xff]   ;;  %v1561_v34 = vld [vmem:[#allocation5 + $0xd4] ss:$8 sps:$4 sm:$0xff]  }
  0x6b   : > { %v252_v41 = vpack.c.bf16 %v249_v37, %v246_v36  ;;  %v181_v27 = vld [vmem:[%s1395_s3] sm:$0xff]  ;;  %v184_v28 = vld [vmem:[%s1395_s3 + $0x18] sm:$0xff]  ;;  %s1155_s5 = scalar_lea.vmem %s1693_s27, 512  ;;  %s1234_s6 = smov [#allocation7]  }
  0x6c   : > { %517 = vmatpush1.bf16.msra.mxu1 %v1456_v19  ;;  %v245_v56 = vsub.f32 %v182_v45, %v239_v53  ;;  %v248_v57 = vsub.f32 %v185_v49, %v242_v54  ;;  %v1563_v35 = vpack.c.bf16 %v184_v28, %v181_v27  ;;  %v1581_v45 = vld [vmem:[#allocation5 + $0xf4] ss:$8 sps:$4 sm:$0xff]   ;;  %p1156_p4 = scmp.ne.s32.totalorder %s1693_s27, %s1155_s5  ;;  %s1159_s7 = sshll.u32 %s1234_s6, 4  ;;  %s1160_s7 = int_to_ptr.vmem [resolvable:$false] %s1159_s7 }
  0x6d   : > { %560 = vmatpush1.bf16.msra.mxu0 %v1458_v20  ;;  %518 = vmatprep.subr.bf16.mxu1 %v1462_v21  ;;  %v255_v42 = vunpack.c.l.bf16 %v252_v41  ;;  %v258_v43 = vunpack.c.h.bf16 %v252_v41  ;;  %s1161_s18 = scalar_lea.vmem %s1160_s7, 1024  ;;  %p1162_p10 = scmp.lt.s32.totalorder %s1693_s27, %s1160_s7 }
  0x6e   : > { %561 = vmatprep.subr.bf16.mxu0 %v1466_v22  ;;  %v251_v59 = vpack.c.bf16 %v248_v57, %v245_v56  ;;  %p1157_p6 = pnand %p1156_p4, %p1343_p12  ;;  %p1163_p13 = scmp.lt.s32.totalorder %s1161_s18, %s1155_s5 }
  0x6f   : > { %v1514_v46 = vsub.f32 %v246_v36, %v255_v42  ;;  %v1516_v47 = vsub.f32 %v249_v37, %v258_v43  ;;  %v1567_v36 = vld [vmem:[#allocation5 + $0xd0] ss:$8 sps:$4 sm:$0xff]   ;;  %v1571_v37 = vld [vmem:[#allocation5 + $0xe4] ss:$8 sps:$4 sm:$0xff]   ;;  %v241_v42 = vunpack.c.h.bf16 %v1563_v35  ;;  %v1577_v43 = vld [vmem:[#allocation5 + $0xe0] ss:$8 sps:$4 sm:$0xff]  }
  0x70   : > { %519 = vmatpush1.bf16.msra.mxu1 %v1468_v23  ;;  %540 = vmatprep.mubr.bf16.mxu1 %v251_v59  ;;  %v254_v49 = vunpack.c.l.bf16 %v251_v59  ;;  %v257_v53 = vunpack.c.h.bf16 %v251_v59  ;;  %p1158_p8 = pneg %p1157_p6  ;;  %p1164_p3 = por %p1163_p13, %p1162_p10 }
  0x71   : > { %562 = vmatpush1.bf16.msra.mxu0 %v1472_v24  ;;  %520 = vmatprep.subr.bf16.mxu1 %v1474_v25  ;;  %1764 = vst [vmem:[#allocation12_spill] sm:$0xff] %v1514_v46  ;;  %1765 = vst [vmem:[#allocation13_spill] sm:$0xff] %v1516_v47  ;;  %v1585_v51 = vsub.f32 %v184_v28, %v241_v42 }
  0x72   : > { %563 = vmatprep.subr.bf16.mxu0 %v1478_v26  ;;  %v260_v46 = vsub.f32 %v245_v56, %v254_v49  ;;  %v263_v47 = vsub.f32 %v248_v57, %v257_v53  ;;  %p1165_p7 = pnand %p1164_p3, %p1158_p8 }
  0x74   : > { %521 = vmatpush1.bf16.msra.mxu1 %v1486_v30  ;;  %v266_v59 = vpack.c.bf16 %v263_v47, %v260_v46 }
  0x75   : > { %564 = vmatpush1.bf16.msra.mxu0 %v1488_v31  ;;  %522 = vmatprep.subr.bf16.mxu1 %v1492_v32 }
  0x76   : > { %565 = vmatprep.subr.bf16.mxu0 %v1494_v33 }
  0x78   : > { %523 = vmatpush1.bf16.msra.mxu1 %v1500_v38 }
  0x79   : > { %566 = vmatpush1.bf16.msra.mxu0 %v1502_v39  ;;  %524 = vmatprep.subr.bf16.mxu1 %v1506_v40 }
  0x7a   : > { %637 = vmatprep.subr.bf16.mxu0 %v1408_v2 }
  0x7c   : > { %584 = vmatmul.mubr.bf16.vlgmr.msra.gmra.mrb[0].mxu0 %v252_v41  ;;  %525 = vmatpush1.bf16.msra.mxu1 %v1510_v44  ;;  %v238_v41 = vunpack.c.l.bf16 %v1563_v35 }
  0x7d   : > { %638 = vmatpush1.bf16.msra.mxu0 %v1413_v4  ;;  %526 = vmatprep.subr.bf16.mxu1 %v1519_v48 }
  0x7e   : > { %639 = vmatprep.subr.bf16.mxu0 %v1420_v6  ;;  %669 = vmatprep.mubr.bf16.mxu0 %v1748_v0  ;;  %v1583_v54 = vsub.f32 %v181_v27, %v238_v41  ;;  %v1589_v0 = vld [vmem:[#allocation5 + $0xf0] ss:$8 sps:$4 sm:$0xff]  }
  0x80   : > { %527 = vmatpush1.bf16.msra.mxu1 %v1528_v52 }
  0x81   : > { %640 = vmatpush1.bf16.msra.mxu0 %v1425_v8  ;;  %528 = vmatprep.subr.bf16.mxu1 %v1534_v55 }
  0x82   : > { %641 = vmatprep.subr.bf16.mxu0 %v1430_v10 }
  0x84   : > { %529 = vmatpush1.bf16.msra.mxu1 %v1539_v58 }
  0x85   : > { %642 = vmatpush1.bf16.msra.mxu0 %v1434_v12  ;;  %530 = vmatprep.subr.bf16.mxu1 %v1543_v60 }
  0x86   : > { %643 = vmatprep.subr.bf16.mxu0 %v1442_v14 }
  0x88   : > { %531 = vmatpush1.bf16.msra.mxu1 %v1547_v61 }
  0x89   : > { %644 = vmatpush1.bf16.msra.mxu0 %v1448_v16  ;;  %532 = vmatprep.subr.bf16.mxu1 %v1551_v62 }
  0x8a   : > { %645 = vmatprep.subr.bf16.mxu0 %v1454_v18 }
  0x8c   : > { %533 = vmatpush1.bf16.msra.mxu1 %v1555_v63 }
  0x8d   : > { %646 = vmatpush1.bf16.msra.mxu0 %v1458_v20  ;;  %534 = vmatprep.subr.bf16.mxu1 %v1561_v34 }
  0x8e   : > { %647 = vmatprep.subr.bf16.mxu0 %v1466_v22 }
  0x90   : > { %535 = vmatpush1.bf16.msra.mxu1 %v1567_v36 }
  0x91   : > { %648 = vmatpush1.bf16.msra.mxu0 %v1472_v24  ;;  %536 = vmatprep.subr.bf16.mxu1 %v1571_v37 }
  0x92   : > { %649 = vmatprep.subr.bf16.mxu0 %v1478_v26  ;;  %v1595_v26 = vpack.c.bf16 %v1585_v51, %v1583_v54 }
  0x94   : > { %537 = vmatpush1.bf16.msra.mxu1 %v1577_v43 }
  0x95   : > { %650 = vmatpush1.bf16.msra.mxu0 %v1488_v31  ;;  %538 = vmatprep.subr.bf16.mxu1 %v1581_v45 }
  0x96   : > { %651 = vmatprep.subr.bf16.mxu0 %v1494_v33 }
  0x98   : > { %539 = vmatpush1.bf16.msra.mxu1 %v1589_v0 }
  0x99   : > { %652 = vmatpush1.bf16.msra.mxu0 %v1502_v39  ;;  %594 = vmatprep.subr.bf16.mxu1 %v1406_v1 }
  0x9a   : > { %680 = vmatprep.subr.bf16.mxu0 %v1406_v1  ;;  %v253_v1 = vunpack.c.l.bf16 %v1595_v26 }
  0x9b   : > { %541 = vmatmul.mubr.bf16.vlgmr.msra.gmra.mrb[0].mxu1 %v1595_v26 }
  0x9c   : > { %670 = vmatmul.mubr.bf16.vlgmr.msra.gmra.mrb[4].mxu0 %v1482_v29  ;;  %595 = vmatpush1.bf16.msra.mxu1 %v1411_v3 }
  0x9d   : > { %681 = vmatpush1.bf16.msra.mxu0 %v1411_v3  ;;  %596 = vmatprep.subr.bf16.mxu1 %v1416_v5  ;;  %v256_v3 = vunpack.c.h.bf16 %v1595_v26 }
  0x9e   : > { %682 = vmatprep.subr.bf16.mxu0 %v1416_v5  ;;  %626 = vmatprep.mubr.bf16.mxu1 %v1522_v50  ;;  %v259_v5 = vsub.f32 %v1583_v54, %v253_v1 }
  0x9f   : > { %712 = vmatprep.mubr.bf16.mxu0 %v266_v59 }
  0xa0   : > { %597 = vmatpush1.bf16.msra.mxu1 %v1422_v7 }
  0xa1   : > { %683 = vmatpush1.bf16.msra.mxu0 %v1422_v7  ;;  %598 = vmatprep.subr.bf16.mxu1 %v1428_v9  ;;  %v262_v7 = vsub.f32 %v1585_v51, %v256_v3 }
  0xa2   : > { %684 = vmatprep.subr.bf16.mxu0 %v1428_v9 }
  0xa3   : > { %v265_v9 = vpack.c.bf16 %v262_v7, %v259_v5 }
  0xa4   : > { %599 = vmatpush1.bf16.msra.mxu1 %v1432_v11 }
  0xa5   : > { %685 = vmatpush1.bf16.msra.mxu0 %v1432_v11  ;;  %600 = vmatprep.subr.bf16.mxu1 %v1438_v13  ;;  %v1766_v11 = vmov 0  }
  0xa6   : > { %686 = vmatprep.subr.bf16.mxu0 %v1438_v13 }
  0xa8   : > { %601 = vmatpush1.bf16.msra.mxu1 %v1444_v15 }
  0xa9   : > { %687 = vmatpush1.bf16.msra.mxu0 %v1444_v15  ;;  %602 = vmatprep.subr.bf16.mxu1 %v1450_v17 }
  0xaa   : > { %688 = vmatprep.subr.bf16.mxu0 %v1450_v17 }
  0xac   : > { %603 = vmatpush1.bf16.msra.mxu1 %v1456_v19 }
  0xad   : > { %689 = vmatpush1.bf16.msra.mxu0 %v1456_v19  ;;  %604 = vmatprep.subr.bf16.mxu1 %v1462_v21 }
  0xae   : > { %690 = vmatprep.subr.bf16.mxu0 %v1462_v21 }
  0xb0   : > { %605 = vmatpush1.bf16.msra.mxu1 %v1468_v23 }
  0xb1   : > { %691 = vmatpush1.bf16.msra.mxu0 %v1468_v23  ;;  %606 = vmatprep.subr.bf16.mxu1 %v1474_v25 }
  0xb2   : > { %692 = vmatprep.subr.bf16.mxu0 %v1474_v25 }
  0xb4   : > { %607 = vmatpush1.bf16.msra.mxu1 %v1486_v30 }
  0xb5   : > { %693 = vmatpush1.bf16.msra.mxu0 %v1486_v30  ;;  %608 = vmatprep.subr.bf16.mxu1 %v1492_v32 }
  0xb6   : > { %694 = vmatprep.subr.bf16.mxu0 %v1492_v32 }
  0xb8   : > { %609 = vmatpush1.bf16.msra.mxu1 %v1500_v38 }
  0xb9   : > { %695 = vmatpush1.bf16.msra.mxu0 %v1500_v38  ;;  %610 = vmatprep.subr.bf16.mxu1 %v1506_v40 }
  0xba   : > { %696 = vmatprep.subr.bf16.mxu0 %v1506_v40 }
  0xbc   : > { %611 = vmatpush1.bf16.msra.mxu1 %v1510_v44 }
  0xbd   : > { %697 = vmatpush1.bf16.msra.mxu0 %v1510_v44  ;;  %612 = vmatprep.subr.bf16.mxu1 %v1519_v48 }
  0xbe   : > { %698 = vmatprep.subr.bf16.mxu0 %v1519_v48 }
  0xc0   : > { %613 = vmatpush1.bf16.msra.mxu1 %v1528_v52 }
  0xc1   : > { %699 = vmatpush1.bf16.msra.mxu0 %v1528_v52  ;;  %614 = vmatprep.subr.bf16.mxu1 %v1534_v55 }
  0xc2   : > { %700 = vmatprep.subr.bf16.mxu0 %v1534_v55 }
  0xc4   : > { %615 = vmatpush1.bf16.msra.mxu1 %v1539_v58 }
  0xc5   : > { %701 = vmatpush1.bf16.msra.mxu0 %v1539_v58  ;;  %616 = vmatprep.subr.bf16.mxu1 %v1543_v60 }
  0xc6   : > { %702 = vmatprep.subr.bf16.mxu0 %v1543_v60 }
  0xc8   : > { %617 = vmatpush1.bf16.msra.mxu1 %v1547_v61 }
  0xc9   : > { %703 = vmatpush1.bf16.msra.mxu0 %v1547_v61  ;;  %618 = vmatprep.subr.bf16.mxu1 %v1551_v62 }
  0xca   : > { %704 = vmatprep.subr.bf16.mxu0 %v1551_v62 }
  0xcc   : > { %619 = vmatpush1.bf16.msra.mxu1 %v1555_v63 }
  0xcd   : > { %705 = vmatpush1.bf16.msra.mxu0 %v1555_v63  ;;  %620 = vmatprep.subr.bf16.mxu1 %v1561_v34 }
  0xce   : > { %706 = vmatprep.subr.bf16.mxu0 %v1561_v34 }
  0xd0   : > { %621 = vmatpush1.bf16.msra.mxu1 %v1567_v36 }
  0xd1   : > { %707 = vmatpush1.bf16.msra.mxu0 %v1567_v36  ;;  %622 = vmatprep.subr.bf16.mxu1 %v1571_v37 }
  0xd2   : > { %708 = vmatprep.subr.bf16.mxu0 %v1571_v37 }
  0xd4   : > { %623 = vmatpush1.bf16.msra.mxu1 %v1577_v43 }
  0xd5   : > { %709 = vmatpush1.bf16.msra.mxu0 %v1577_v43  ;;  %624 = vmatprep.subr.bf16.mxu1 %v1581_v45 }
  0xd6   : > { %710 = vmatprep.subr.bf16.mxu0 %v1581_v45 }
  0xd8   : > { %625 = vmatpush1.bf16.msra.mxu1 %v1589_v0 }
  0xd9   : > { %711 = vmatpush1.bf16.msra.mxu0 %v1589_v0  ;;  %v1767_v0 = vld [vmem:[#allocation11_spill] sm:$0xff] }
  0xda   : > { %723 = vmatprep.subr.bf16.mxu0 %v1408_v2  ;;  %v1768_v2 = vld [vmem:[#allocation13_spill] sm:$0xff] }
  0xdb   : > { %627 = vmatmul.mubr.bf16.vlgmr.msra.gmra.mrb[4].mxu1 %v1563_v35 }
  0xdc   : > { %713 = vmatmul.mubr.bf16.vlgmr.msra.gmra.mrb[4].mxu0 %v265_v9 }
  0xdd   : > { %724 = vmatpush1.bf16.msra.mxu0 %v1413_v4  ;;  %755 = vmatprep.mubr.bf16.mxu0 %v1766_v11  ;;  %v1769_v4 = vld [vmem:[#allocation12_spill] sm:$0xff] }
  0xde   : > { %725 = vmatprep.subr.bf16.mxu0 %v1420_v6  ;;  %v1770_v6 = vpack.c.bf16 %v1768_v2, %v1769_v4 }
  0xe1   : > { %726 = vmatpush1.bf16.msra.mxu0 %v1425_v8 }
  0xe2   : > { %727 = vmatprep.subr.bf16.mxu0 %v1430_v10 }
  0xe5   : > { %728 = vmatpush1.bf16.msra.mxu0 %v1434_v12 }
  0xe6   : > { %729 = vmatprep.subr.bf16.mxu0 %v1442_v14 }
  0xe9   : > { %730 = vmatpush1.bf16.msra.mxu0 %v1448_v16 }
  0xea   : > { %731 = vmatprep.subr.bf16.mxu0 %v1454_v18 }
  0xed   : > { %732 = vmatpush1.bf16.msra.mxu0 %v1458_v20 }
  0xee   : > { %733 = vmatprep.subr.bf16.mxu0 %v1466_v22 }
  0xf1   : > { %734 = vmatpush1.bf16.msra.mxu0 %v1472_v24 }
  0xf2   : > { %735 = vmatprep.subr.bf16.mxu0 %v1767_v0 }
  0xf5   : > { %736 = vmatpush1.bf16.msra.mxu0 %v1488_v31 }
  0xf6   : > { %737 = vmatprep.subr.bf16.mxu0 %v1494_v33 }
  0xf9   : > { %738 = vmatpush1.bf16.msra.mxu0 %v1502_v39 }
  0xfc   : > { %756 = vmatmul.mubr.bf16.vlgmr.msra.gmra.mrb[4].mxu0 %v1770_v6 }
 0x14f   : > { %v585_v8 = vpop.f32.mrb[0].mxu0 }
 0x150   : > { %v587_v10 = vpop.f32.mrb[1].mxu0 }
 0x151   : > { %v589_v12 = vpop.f32.mrb[2].mxu0 }
 0x152   : > { %v591_v13 = vpop.f32.mrb[3].mxu0 }
 0x16e   : > { %v542_v14 = vpop.f32.mrb[0].mxu1 }
 0x16f   : > { %v586_v15 = vadd.f32 %v585_v8, %v542_v14  ;;  %v544_v16 = vpop.f32.mrb[1].mxu1 }
 0x170   : > { %v588_v17 = vadd.f32 %v587_v10, %v544_v16  ;;  %v546_v18 = vpop.f32.mrb[2].mxu1 }
 0x171   : > { %v590_v19 = vadd.f32 %v589_v12, %v546_v18  ;;  %v548_v20 = vpop.f32.mrb[3].mxu1 }
 0x172   : > { %v592_v21 = vadd.f32 %v591_v13, %v548_v20 }
 0x1ae   : > { %v628_v22 = vpop.f32.mrb[4].mxu1 }
 0x1af   : > { %v629_v23 = vadd.f32 %v628_v22, %v586_v15  ;;  %v630_v24 = vpop.f32.mrb[5].mxu1 }
 0x1b0   : > { %v631_v25 = vadd.f32 %v630_v24, %v588_v17  ;;  %v632_v26 = vpop.f32.mrb[6].mxu1 }
 0x1b1   : > { %v633_v29 = vadd.f32 %v632_v26, %v590_v19  ;;  %v634_v30 = vpop.f32.mrb[7].mxu1 }
 0x1b2   : > { %v635_v31 = vadd.f32 %v634_v30, %v592_v21 }
 0x1cf   : > { %v757_v32 = vpop.f32.mrb[4].mxu0 }
 0x1d0   : > { %v940_v33 = vadd.f32 %v757_v32, %v629_v23  ;;  %v759_v38 = vpop.f32.mrb[5].mxu0 }
 0x1d1   : > { %v943_v39 = vadd.f32 %v759_v38, %v631_v25  ;;  %v761_v40 = vpop.f32.mrb[6].mxu0 }
 0x1d2   : > { %770 = vst [vmem:[%s177_s17] sm:$0xff] %v940_v33  ;;  %v946_v44 = vadd.f32 %v761_v40, %v633_v29  ;;  %v763_v46 = vpop.f32.mrb[7].mxu0 }
 0x1d3   : > { %771 = vst [vmem:[%s177_s17 + $0x8] sm:$0xff] %v943_v39  ;;  %v949_v47 = vadd.f32 %v763_v46, %v635_v31 }
 0x1d4   : > { %772 = vst [vmem:[%s177_s17 + $0x10] sm:$0xff] %v946_v44 }
 0x1d5   : > { %773 = vst [vmem:[%s177_s17 + $0x18] sm:$0xff] %v949_v47 }
 0x1d6   : > { %1168 = shalt.err (!%p1165_p7)
}
 0x1d7   : > { %s1169_s24 = scalar_lea.hbm %s1698_s4, 512  ;;  %s1173_s26 = scalar_lea.hbm %s1744_s2, 1024 }
 0x1d8   : > { %p1170_p9 = scmp.ne.s32.totalorder %s1698_s4, %s1169_s24  ;;  %p1174_p5 = scmp.lt.u32.totalorder %s1698_s4, %s1744_s2 }
 0x1d9   : > { %p1175_p11 = scmp.lt.u32.totalorder %s1173_s26, %s1169_s24  ;;  %p1177_p4 = scmp.lt.u32.totalorder %s1169_s24, %s1698_s4 }
 0x1da   : > { %p1171_p2 = pnand %p1170_p9, %p1343_p12 }
 0x1db   : > { %p1176_p1 = por %p1175_p11, %p1174_p5 }
 0x1dc   : > { %p1172_p0 = pneg %p1171_p2 }
 0x1dd   : > { %p1178_p6 = por %p1177_p4, %p1176_p1 }
 0x1df   : > { %p1179_p8 = pnand %p1178_p6, %p1172_p0 }
 0x1e1   : > { %1182 = shalt.err (!%p1179_p8)
}
 0x1e2   : > { %s1235_s3 = smov 256   ;;  %s1236_s15 = smov 16  }
 0x1e3   : > { %967 = dma.vmem_to_hbm [thread:$0]  (%p1343_p12), %s1693_s27, 512, %s1698_s4, %s775_s13, %s1235_s3, %s1235_s3, %s1236_s15  }
 0x1e4 PF: > { %s804_s17 = sand.u32 1, %s1213_s9   ;;  %p1771_p10 = scmp.ne.s32.totalorder %s1753_s16, 0 }
 0x1e5   : > { %p1772_p13 = scmp.ge.s32.totalorder %s1225_s12, 2  ;;  %s805_s19 = scalar_lea.sflag [#allocation4], %s804_s17 }
 0x1e7   : > { %p978_p3 = pnand %p1772_p13, %p1771_p10 }
 0x1e9   : > { %1208 = dma.done.wait (!%p978_p3), %s805_s19, 512  }
 0x1ea   : > { %1210 = vsyncadd (!%p978_p3), %s805_s19, 4294966784  ;;  %p16_p7 = scmp.ge.s32.totalorder %s1308_s21, 4   ;;  %s1773_s9 = smov %s1217_s10 }
 0x1eb   : > { %s1774_s10 = smov %s1221_s11  ;;  %s1775_s11 = smov %s1339_s8 }
 0x1ec   : > { %s1776_s12 = smov %s1308_s21  ;;  %18 = sbr.rel (!%p16_p7) target bundleno = 6 (0x6), region = 77 }
 0x1f3   :  { %810 = vsyncpa [#allocation3], 1 }
 0x1f4   :  { %812 = vsyncpa [#allocation3 + $0x1], 1 }
 0x1f5   :  { %813 = vsyncpa [#allocation6], 1 }
 0x1f6   :  { %814 = vsyncpa [#allocation4], 1 }
 0x1f7   :  { %816 = vsyncpa [#allocation4 + $0x1], 1 }

</bundles_post_ra>
